<compile_context>
chip_gen: v7x
topology: tpu7x:2x2x1
jax: 0.10.0
libtpu: 0.0.40
codegen_flags: <defaults>
</compile_context>

<pallas_src>
import jax
import jax.numpy as jnp
from jax import lax
from jax.experimental import pallas as pl
from jax.experimental.pallas import tpu as pltpu


def _pick_row_tile(m, n, tile_rows, budget_bytes=16 * 1024 * 1024):
    """Largest row tile <= tile_rows whose 4 double-buffered f32 (TM, N) tiles fit budget."""
    per_row_bytes = 4 * n * 4 * 2          # 4 streamed arrays, f32, double-buffered
    tm = min(m, tile_rows, max(8, budget_bytes // per_row_bytes))
    if tm >= m:
        return m
    return max(8, (tm // 8) * 8)


def primal_general_energy(x, H, b, w, *, tile_rows=512):
    """General ROF primal energy. x, H, b, w: [1, M, N] with M == N. Returns a scalar."""
    assert x.ndim == 3 and x.shape[0] == 1, "expected [1, M, N]"
    assert H.shape == x.shape and b.shape == x.shape and w.shape == x.shape
    _, M, N = x.shape
    assert M == N, "torch.matmul in the reference requires square inputs (M == N)"

    x2 = x.reshape(M, N).astype(jnp.float32)
    h2 = H.reshape(M, N).astype(jnp.float32)
    b2 = b.reshape(M, N).astype(jnp.float32)
    w2 = w.reshape(M, N).astype(jnp.float32)

    # Tiny reduction vectors (one cheap XLA streaming pass over X).
    u = jnp.sum(x2, axis=1).reshape(1, N)        # rowsum(X), length N
    c = jnp.sum(x2, axis=0).reshape(M, 1)        # colsum(X), length M (== N)

    TM = _pick_row_tile(M, N, tile_rows)
    num_tiles = int(pl.cdiv(M, TM))
    m_pad = num_tiles * TM
    if m_pad > M:                                # keep the (TM, 1) colsum blocks in-bounds
        c = jnp.pad(c, ((0, m_pad - M), (0, 0)))

    def kernel(u_ref, c_ref, x_ref, h_ref, b_ref, w_ref, o_ref):
        i = pl.program_id(0)
        last = pl.num_programs(0) - 1

        def tile_energy(mask_ragged):
            xt = x_ref[...]
            ht = h_ref[...]
            bt = b_ref[...]
            wt = w_ref[...]
            ut = u_ref[...]                      # (1, N)  rowsum(X)
            ct = c_ref[...]                      # (TM, 1) colsum(X) slice for this tile
            if mask_ragged:
                rows = i * TM + lax.broadcasted_iota(jnp.int32, (TM, 1), 0)
                valid = rows < M
                xt = jnp.where(valid, xt, 0.0)
                ht = jnp.where(valid, ht, 0.0)
                bt = jnp.where(valid, bt, 0.0)
                wt = jnp.where(valid, wt, 0.0)
                wy = jnp.where(rows < (M - 1), wt, 0.0)   # kill the spurious (M-1, M) pair
            else:
                wy = wt

            # nrg1, algebraically collapsed (no matmuls needed):
            hv = jnp.sum(ht * ut, axis=1, keepdims=True)        # (TM, 1) = (H @ u) tile
            quad = 0.5 * jnp.sum(hv * ct)
            lin = jnp.sum(bt * ut)

            # Weighted forward-gradient L1 term, tile-local part.
            gx = jnp.sum(jnp.abs(xt[:, 1:] - xt[:, :-1]) * wt[:, :-1])
            gy = jnp.sum(jnp.abs(xt[1:, :] - xt[:-1, :]) * wy[:-1, :])
            return quad + lin + gx + gy

        @pl.when(i < last)
        def _():
            o_ref[...] = jnp.full(o_ref.shape, tile_energy(False), dtype=jnp.float32)

        @pl.when(i == last)
        def _():
            o_ref[...] = jnp.full(o_ref.shape, tile_energy(True), dtype=jnp.float32)

    out = pl.pallas_call(
        kernel,
        out_shape=jax.ShapeDtypeStruct((num_tiles, 8, 128), jnp.float32),
        grid=(num_tiles,),
        in_specs=[
            pl.BlockSpec((1, N), lambda i: (0, 0)),      # u: tiny, constant index
            pl.BlockSpec((TM, 1), lambda i: (i, 0)),     # colsum(X) slice
            pl.BlockSpec((TM, N), lambda i: (i, 0)),     # X row tile
            pl.BlockSpec((TM, N), lambda i: (i, 0)),     # H row tile
            pl.BlockSpec((TM, N), lambda i: (i, 0)),     # b row tile
            pl.BlockSpec((TM, N), lambda i: (i, 0)),     # w row tile
        ],
        out_specs=pl.BlockSpec((1, 8, 128), lambda i: (i, 0, 0)),
        compiler_params=pltpu.CompilerParams(
            dimension_semantics=("parallel",),
            vmem_limit_bytes=48 * 1024 * 1024,
        ),
    )(u, c, x2, h2, b2, w2)

    energy = jnp.sum(out[:, 0, 0])

    # Cross-tile y-gradient row pairs ((num_tiles - 1) rows; negligible XLA work).
    if num_tiles > 1:
        eb = jnp.arange(1, num_tiles) * TM               # first row of each non-first tile
        energy = energy + jnp.sum(jnp.abs(x2[eb, :] - x2[eb - 1, :]) * w2[eb - 1, :])
    return energy


if __name__ == "__main__":
    key = jax.random.PRNGKey(0)
    kx, kh, kb, kw = jax.random.split(key, 4)

    def make_inputs(n):
        x = jax.random.normal(kx, (1, n, n), dtype=jnp.float32)
        H = jax.random.normal(kh, (1, n, n), dtype=jnp.float32)
        b = jax.random.normal(kb, (1, n, n), dtype=jnp.float32)
        w = jax.random.uniform(kw, (1, n, n), dtype=jnp.float32)
        return x, H, b, w

    def reference(x, H, b, w):
        X, Hm, B, W = x[0], H[0], b[0], w[0]
        hp = jax.lax.Precision.HIGHEST
        nrg1 = (0.5 * jnp.sum(jnp.dot(X, jnp.dot(Hm, X, precision=hp), precision=hp))
                + jnp.sum(jnp.dot(B, X, precision=hp)))
        g0 = jnp.zeros_like(X).at[:, :-1].set(X[:, 1:] - X[:, :-1])
        g1 = jnp.zeros_like(X).at[:-1, :].set(X[1:, :] - X[:-1, :])
        nrg2 = jnp.sum(jnp.abs(g0 * W)) + jnp.sum(jnp.abs(g1 * W))
        return nrg1 + nrg2

    ok = True
    # (128, single full-extent tile), (256, two even tiles + cross-tile gy pairs),
    # (200, four tiles with a ragged/masked last tile).
    for n, tr in [(128, 512), (256, 128), (200, 64)]:
        x, H, b, w = make_inputs(n)
        out = jax.block_until_ready(primal_general_energy(x, H, b, w, tile_rows=tr))
        ref = reference(x, H, b, w)
        if not jnp.allclose(out, ref, rtol=5e-3, atol=1e-2):
            ok = False
            print(f"mismatch at n={n}: kernel={out}, ref={ref}")

    if ok:
        print("KERNEL_OK")
</pallas_src>

<mosaic_0001>
module attributes {stable_mosaic.version = 11 : i64} {
  func.func @kernel(%arg0: i32, %arg1: memref<1x128xf32, #tpu.memory_space<vmem>>, %arg2: memref<128x1xf32, #tpu.memory_space<vmem>>, %arg3: memref<128x128xf32, #tpu.memory_space<vmem>>, %arg4: memref<128x128xf32, #tpu.memory_space<vmem>>, %arg5: memref<128x128xf32, #tpu.memory_space<vmem>>, %arg6: memref<128x128xf32, #tpu.memory_space<vmem>>, %arg7: memref<1x8x128xf32, #tpu.memory_space<vmem>>) attributes {dimension_semantics = [#tpu.dimension_semantics<parallel>], iteration_bounds = array<i64: 1>, scalar_prefetch = 0 : i64, scratch_operands = 0 : i64, tpu.core_type = #tpu.core_type<tc>, window_params = [{pipeline_mode = #tpu.pipeline_mode<synchronous>, transform_indices = @transform_0, window_bounds = array<i64: 1, 128>}, {transform_indices = @transform_1, window_bounds = array<i64: 128, 1>}, {transform_indices = @transform_2, window_bounds = array<i64: 128, 128>}, {transform_indices = @transform_3, window_bounds = array<i64: 128, 128>}, {transform_indices = @transform_4, window_bounds = array<i64: 128, 128>}, {transform_indices = @transform_5, window_bounds = array<i64: 128, 128>}, {transform_indices = @transform_6, window_bounds = array<i64: 1, 8, 128>}]} {
    %c0_i32 = arith.constant 0 : i32
    %0 = arith.cmpi slt, %arg0, %c0_i32 : i32
    %1 = arith.extui %0 : i1 to i32
    %c0_i32_0 = arith.constant 0 : i32
    %2 = arith.cmpi ne, %1, %c0_i32_0 : i32
    scf.if %2 {
      %c0 = arith.constant 0 : index
      %c0_3 = arith.constant 0 : index
      %6 = vector.load %arg3[%c0, %c0_3] : memref<128x128xf32, #tpu.memory_space<vmem>>, vector<128x128xf32>
      %c0_4 = arith.constant 0 : index
      %c0_5 = arith.constant 0 : index
      %7 = vector.load %arg4[%c0_4, %c0_5] : memref<128x128xf32, #tpu.memory_space<vmem>>, vector<128x128xf32>
      %c0_6 = arith.constant 0 : index
      %c0_7 = arith.constant 0 : index
      %8 = vector.load %arg5[%c0_6, %c0_7] : memref<128x128xf32, #tpu.memory_space<vmem>>, vector<128x128xf32>
      %c0_8 = arith.constant 0 : index
      %c0_9 = arith.constant 0 : index
      %9 = vector.load %arg6[%c0_8, %c0_9] : memref<128x128xf32, #tpu.memory_space<vmem>>, vector<128x128xf32>
      %c0_10 = arith.constant 0 : index
      %c0_11 = arith.constant 0 : index
      %10 = vector.load %arg1[%c0_10, %c0_11] : memref<1x128xf32, #tpu.memory_space<vmem>>, vector<1x128xf32>
      %c0_12 = arith.constant 0 : index
      %c0_13 = arith.constant 0 : index
      %11 = vector.load %arg2[%c0_12, %c0_13] : memref<128x1xf32, #tpu.memory_space<vmem>>, vector<128x1xf32>
      %12 = vector.broadcast %10 : vector<1x128xf32> to vector<128x128xf32>
      %13 = arith.mulf %7, %12 : vector<128x128xf32>
      %cst = arith.constant dense<0.000000e+00> : vector<128xf32>
      %14 = vector.multi_reduction <add>, %13, %cst [1] : vector<128x128xf32> to vector<128xf32>
      %15 = vector.shape_cast %14 : vector<128xf32> to vector<128x1xf32>
      %16 = arith.mulf %15, %11 : vector<128x1xf32>
      %17 = vector.shape_cast %16 : vector<128x1xf32> to vector<1x128x1xf32>
      %cst_14 = arith.constant dense<0.000000e+00> : vector<1xf32>
      %18 = vector.multi_reduction <add>, %17, %cst_14 [1, 2] : vector<1x128x1xf32> to vector<1xf32>
      %19 = vector.shape_cast %18 : vector<1xf32> to vector<1x1x1xf32>
      %20 = vector.extract %19[0, 0, 0] : f32 from vector<1x1x1xf32>
      %cst_15 = arith.constant 5.000000e-01 : f32
      %21 = arith.mulf %cst_15, %20 : f32
      %22 = vector.broadcast %10 : vector<1x128xf32> to vector<128x128xf32>
      %23 = arith.mulf %8, %22 : vector<128x128xf32>
      %24 = vector.shape_cast %23 : vector<128x128xf32> to vector<1x128x128xf32>
      %cst_16 = arith.constant dense<0.000000e+00> : vector<1xf32>
      %25 = vector.multi_reduction <add>, %24, %cst_16 [1, 2] : vector<1x128x128xf32> to vector<1xf32>
      %26 = vector.shape_cast %25 : vector<1xf32> to vector<1x1x1xf32>
      %27 = vector.extract %26[0, 0, 0] : f32 from vector<1x1x1xf32>
      %28 = vector.extract_strided_slice %6 {offsets = [0, 1], sizes = [128, 127], strides = [1, 1]} : vector<128x128xf32> to vector<128x127xf32>
      %29 = vector.extract_strided_slice %6 {offsets = [0, 0], sizes = [128, 127], strides = [1, 1]} : vector<128x128xf32> to vector<128x127xf32>
      %30 = arith.subf %28, %29 : vector<128x127xf32>
      %31 = math.absf %30 : vector<128x127xf32>
      %32 = vector.extract_strided_slice %9 {offsets = [0, 0], sizes = [128, 127], strides = [1, 1]} : vector<128x128xf32> to vector<128x127xf32>
      %33 = arith.mulf %31, %32 : vector<128x127xf32>
      %34 = vector.shape_cast %33 : vector<128x127xf32> to vector<1x128x127xf32>
      %cst_17 = arith.constant dense<0.000000e+00> : vector<1xf32>
      %35 = vector.multi_reduction <add>, %34, %cst_17 [1, 2] : vector<1x128x127xf32> to vector<1xf32>
      %36 = vector.shape_cast %35 : vector<1xf32> to vector<1x1x1xf32>
      %37 = vector.extract %36[0, 0, 0] : f32 from vector<1x1x1xf32>
      %38 = vector.extract_strided_slice %6 {offsets = [1, 0], sizes = [127, 128], strides = [1, 1]} : vector<128x128xf32> to vector<127x128xf32>
      %39 = vector.extract_strided_slice %6 {offsets = [0, 0], sizes = [127, 128], strides = [1, 1]} : vector<128x128xf32> to vector<127x128xf32>
      %40 = arith.subf %38, %39 : vector<127x128xf32>
      %41 = math.absf %40 : vector<127x128xf32>
      %42 = vector.extract_strided_slice %9 {offsets = [0, 0], sizes = [127, 128], strides = [1, 1]} : vector<128x128xf32> to vector<127x128xf32>
      %43 = arith.mulf %41, %42 : vector<127x128xf32>
      %44 = vector.shape_cast %43 : vector<127x128xf32> to vector<1x127x128xf32>
      %cst_18 = arith.constant dense<0.000000e+00> : vector<1xf32>
      %45 = vector.multi_reduction <add>, %44, %cst_18 [1, 2] : vector<1x127x128xf32> to vector<1xf32>
      %46 = vector.shape_cast %45 : vector<1xf32> to vector<1x1x1xf32>
      %47 = vector.extract %46[0, 0, 0] : f32 from vector<1x1x1xf32>
      %48 = arith.addf %21, %27 : f32
      %49 = arith.addf %48, %37 : f32
      %50 = arith.addf %49, %47 : f32
      %51 = vector.broadcast %50 : f32 to vector<1x8x128xf32>
      %c0_19 = arith.constant 0 : index
      %c0_20 = arith.constant 0 : index
      %c0_21 = arith.constant 0 : index
      %52 = vector.load %arg7[%c0_19, %c0_20, %c0_21] : memref<1x8x128xf32, #tpu.memory_space<vmem>>, vector<1x8x128xf32>
      tpu.vector_store %arg7[%c0_19, %c0_20, %c0_21], %51 {strides = array<i32>} : memref<1x8x128xf32, #tpu.memory_space<vmem>>, vector<1x8x128xf32>,
    } else {
    }
    %c0_i32_1 = arith.constant 0 : i32
    %3 = arith.cmpi eq, %arg0, %c0_i32_1 : i32
    %4 = arith.extui %3 : i1 to i32
    %c0_i32_2 = arith.constant 0 : i32
    %5 = arith.cmpi ne, %4, %c0_i32_2 : i32
    scf.if %5 {
      %c0 = arith.constant 0 : index
      %c0_3 = arith.constant 0 : index
      %6 = vector.load %arg3[%c0, %c0_3] : memref<128x128xf32, #tpu.memory_space<vmem>>, vector<128x128xf32>
      %c0_4 = arith.constant 0 : index
      %c0_5 = arith.constant 0 : index
      %7 = vector.load %arg4[%c0_4, %c0_5] : memref<128x128xf32, #tpu.memory_space<vmem>>, vector<128x128xf32>
      %c0_6 = arith.constant 0 : index
      %c0_7 = arith.constant 0 : index
      %8 = vector.load %arg5[%c0_6, %c0_7] : memref<128x128xf32, #tpu.memory_space<vmem>>, vector<128x128xf32>
      %c0_8 = arith.constant 0 : index
      %c0_9 = arith.constant 0 : index
      %9 = vector.load %arg6[%c0_8, %c0_9] : memref<128x128xf32, #tpu.memory_space<vmem>>, vector<128x128xf32>
      %c0_10 = arith.constant 0 : index
      %c0_11 = arith.constant 0 : index
      %10 = vector.load %arg1[%c0_10, %c0_11] : memref<1x128xf32, #tpu.memory_space<vmem>>, vector<1x128xf32>
      %c0_12 = arith.constant 0 : index
      %c0_13 = arith.constant 0 : index
      %11 = vector.load %arg2[%c0_12, %c0_13] : memref<128x1xf32, #tpu.memory_space<vmem>>, vector<128x1xf32>
      %c128_i32 = arith.constant 128 : i32
      %12 = arith.muli %arg0, %c128_i32 : i32
      %13 = tpu.iota {dimensions = array<i32: 0>} : vector<128x1xi32>
      %14 = vector.broadcast %12 : i32 to vector<128x1xi32>
      %15 = arith.addi %14, %13 : vector<128x1xi32>
      %c128_i32_14 = arith.constant 128 : i32
      %16 = vector.broadcast %c128_i32_14 : i32 to vector<128x1xi32>
      %17 = arith.cmpi slt, %15, %16 : vector<128x1xi32>
      %cst = arith.constant 0.000000e+00 : f32
      %18 = vector.shape_cast %17 : vector<128x1xi1> to vector<128x1xi1>
      %19 = vector.broadcast %18 : vector<128x1xi1> to vector<128x128xi1>
      %20 = vector.broadcast %cst : f32 to vector<128x128xf32>
      %21 = arith.select %19, %6, %20 : vector<128x128xi1>, vector<128x128xf32>
      %cst_15 = arith.constant 0.000000e+00 : f32
      %22 = vector.shape_cast %17 : vector<128x1xi1> to vector<128x1xi1>
      %23 = vector.broadcast %22 : vector<128x1xi1> to vector<128x128xi1>
      %24 = vector.broadcast %cst_15 : f32 to vector<128x128xf32>
      %25 = arith.select %23, %7, %24 : vector<128x128xi1>, vector<128x128xf32>
      %cst_16 = arith.constant 0.000000e+00 : f32
      %26 = vector.shape_cast %17 : vector<128x1xi1> to vector<128x1xi1>
      %27 = vector.broadcast %26 : vector<128x1xi1> to vector<128x128xi1>
      %28 = vector.broadcast %cst_16 : f32 to vector<128x128xf32>
      %29 = arith.select %27, %8, %28 : vector<128x128xi1>, vector<128x128xf32>
      %cst_17 = arith.constant 0.000000e+00 : f32
      %30 = vector.shape_cast %17 : vector<128x1xi1> to vector<128x1xi1>
      %31 = vector.broadcast %30 : vector<128x1xi1> to vector<128x128xi1>
      %32 = vector.broadcast %cst_17 : f32 to vector<128x128xf32>
      %33 = arith.select %31, %9, %32 : vector<128x128xi1>, vector<128x128xf32>
      %c127_i32 = arith.constant 127 : i32
      %34 = vector.broadcast %c127_i32 : i32 to vector<128x1xi32>
      %35 = arith.cmpi slt, %15, %34 : vector<128x1xi32>
      %cst_18 = arith.constant 0.000000e+00 : f32
      %36 = vector.shape_cast %35 : vector<128x1xi1> to vector<128x1xi1>
      %37 = vector.broadcast %36 : vector<128x1xi1> to vector<128x128xi1>
      %38 = vector.broadcast %cst_18 : f32 to vector<128x128xf32>
      %39 = arith.select %37, %33, %38 : vector<128x128xi1>, vector<128x128xf32>
      %40 = vector.broadcast %10 : vector<1x128xf32> to vector<128x128xf32>
      %41 = arith.mulf %25, %40 : vector<128x128xf32>
      %cst_19 = arith.constant dense<0.000000e+00> : vector<128xf32>
      %42 = vector.multi_reduction <add>, %41, %cst_19 [1] : vector<128x128xf32> to vector<128xf32>
      %43 = vector.shape_cast %42 : vector<128xf32> to vector<128x1xf32>
      %44 = arith.mulf %43, %11 : vector<128x1xf32>
      %45 = vector.shape_cast %44 : vector<128x1xf32> to vector<1x128x1xf32>
      %cst_20 = arith.constant dense<0.000000e+00> : vector<1xf32>
      %46 = vector.multi_reduction <add>, %45, %cst_20 [1, 2] : vector<1x128x1xf32> to vector<1xf32>
      %47 = vector.shape_cast %46 : vector<1xf32> to vector<1x1x1xf32>
      %48 = vector.extract %47[0, 0, 0] : f32 from vector<1x1x1xf32>
      %cst_21 = arith.constant 5.000000e-01 : f32
      %49 = arith.mulf %cst_21, %48 : f32
      %50 = vector.broadcast %10 : vector<1x128xf32> to vector<128x128xf32>
      %51 = arith.mulf %29, %50 : vector<128x128xf32>
      %52 = vector.shape_cast %51 : vector<128x128xf32> to vector<1x128x128xf32>
      %cst_22 = arith.constant dense<0.000000e+00> : vector<1xf32>
      %53 = vector.multi_reduction <add>, %52, %cst_22 [1, 2] : vector<1x128x128xf32> to vector<1xf32>
      %54 = vector.shape_cast %53 : vector<1xf32> to vector<1x1x1xf32>
      %55 = vector.extract %54[0, 0, 0] : f32 from vector<1x1x1xf32>
      %56 = vector.extract_strided_slice %21 {offsets = [0, 1], sizes = [128, 127], strides = [1, 1]} : vector<128x128xf32> to vector<128x127xf32>
      %57 = vector.extract_strided_slice %21 {offsets = [0, 0], sizes = [128, 127], strides = [1, 1]} : vector<128x128xf32> to vector<128x127xf32>
      %58 = arith.subf %56, %57 : vector<128x127xf32>
      %59 = math.absf %58 : vector<128x127xf32>
      %60 = vector.extract_strided_slice %33 {offsets = [0, 0], sizes = [128, 127], strides = [1, 1]} : vector<128x128xf32> to vector<128x127xf32>
      %61 = arith.mulf %59, %60 : vector<128x127xf32>
      %62 = vector.shape_cast %61 : vector<128x127xf32> to vector<1x128x127xf32>
      %cst_23 = arith.constant dense<0.000000e+00> : vector<1xf32>
      %63 = vector.multi_reduction <add>, %62, %cst_23 [1, 2] : vector<1x128x127xf32> to vector<1xf32>
      %64 = vector.shape_cast %63 : vector<1xf32> to vector<1x1x1xf32>
      %65 = vector.extract %64[0, 0, 0] : f32 from vector<1x1x1xf32>
      %66 = vector.extract_strided_slice %21 {offsets = [1, 0], sizes = [127, 128], strides = [1, 1]} : vector<128x128xf32> to vector<127x128xf32>
      %67 = vector.extract_strided_slice %21 {offsets = [0, 0], sizes = [127, 128], strides = [1, 1]} : vector<128x128xf32> to vector<127x128xf32>
      %68 = arith.subf %66, %67 : vector<127x128xf32>
      %69 = math.absf %68 : vector<127x128xf32>
      %70 = vector.extract_strided_slice %39 {offsets = [0, 0], sizes = [127, 128], strides = [1, 1]} : vector<128x128xf32> to vector<127x128xf32>
      %71 = arith.mulf %69, %70 : vector<127x128xf32>
      %72 = vector.shape_cast %71 : vector<127x128xf32> to vector<1x127x128xf32>
      %cst_24 = arith.constant dense<0.000000e+00> : vector<1xf32>
      %73 = vector.multi_reduction <add>, %72, %cst_24 [1, 2] : vector<1x127x128xf32> to vector<1xf32>
      %74 = vector.shape_cast %73 : vector<1xf32> to vector<1x1x1xf32>
      %75 = vector.extract %74[0, 0, 0] : f32 from vector<1x1x1xf32>
      %76 = arith.addf %49, %55 : f32
      %77 = arith.addf %76, %65 : f32
      %78 = arith.addf %77, %75 : f32
      %79 = vector.broadcast %78 : f32 to vector<1x8x128xf32>
      %c0_25 = arith.constant 0 : index
      %c0_26 = arith.constant 0 : index
      %c0_27 = arith.constant 0 : index
      %80 = vector.load %arg7[%c0_25, %c0_26, %c0_27] : memref<1x8x128xf32, #tpu.memory_space<vmem>>, vector<1x8x128xf32>
      tpu.vector_store %arg7[%c0_25, %c0_26, %c0_27], %79 {strides = array<i32>} : memref<1x8x128xf32, #tpu.memory_space<vmem>>, vector<1x8x128xf32>,
    } else {
    }
    return
  }
  func.func @transform_0(%arg0: i32) -> (i32, i32) {
    %c0_i32 = arith.constant 0 : i32
    %c0_i32_0 = arith.constant 0 : i32
    %c0_i32_1 = arith.constant 0 : i32
    return %c0_i32, %c0_i32_0 : i32, i32
  }
  func.func @transform_1(%arg0: i32) -> (i32, i32) {
    %c0_i32 = arith.constant 0 : i32
    %c0_i32_0 = arith.constant 0 : i32
    return %arg0, %c0_i32 : i32, i32
  }
  func.func @transform_2(%arg0: i32) -> (i32, i32) {
    %c0_i32 = arith.constant 0 : i32
    %c0_i32_0 = arith.constant 0 : i32
    return %arg0, %c0_i32 : i32, i32
  }
  func.func @transform_3(%arg0: i32) -> (i32, i32) {
    %c0_i32 = arith.constant 0 : i32
    %c0_i32_0 = arith.constant 0 : i32
    return %arg0, %c0_i32 : i32, i32
  }
  func.func @transform_4(%arg0: i32) -> (i32, i32) {
    %c0_i32 = arith.constant 0 : i32
    %c0_i32_0 = arith.constant 0 : i32
    return %arg0, %c0_i32 : i32, i32
  }
  func.func @transform_5(%arg0: i32) -> (i32, i32) {
    %c0_i32 = arith.constant 0 : i32
    %c0_i32_0 = arith.constant 0 : i32
    return %arg0, %c0_i32 : i32, i32
  }
  func.func @transform_6(%arg0: i32) -> (i32, i32, i32) {
    %c0_i32 = arith.constant 0 : i32
    %c0_i32_0 = arith.constant 0 : i32
    %c0_i32_1 = arith.constant 0 : i32
    return %arg0, %c0_i32, %c0_i32_0 : i32, i32, i32
  }
}

</mosaic_0001>

<bundles_post_ra>
// kernel: tpu_custom_call.1
= control target key start
LH: loop header
LB: loop body
LE: loop exit
PB: predicated region body
PF: predicated region fallthrough
CT: control target
= control target key end

     0   :  { %11 = vsyncpa [#allocation3], 0  ;;  %s2475_s0 = inlined_call_operand.vmem [shape: f32[1,128], index: 0, kind: input, shape index: {}]   ;;  %s2476_s1 = inlined_call_operand.vmem [shape: f32[128,1], index: 1, kind: input, shape index: {}]   ;;  %s2477_s2 = inlined_call_operand.vmem [shape: f32[128,128], index: 2, kind: input, shape index: {}]   ;;  %s2478_s3 = inlined_call_operand.hbm [shape: f32[128,128], index: 3, kind: input, shape index: {}]   ;;  %s2479_s4 = inlined_call_operand.hbm [shape: f32[128,128], index: 4, kind: input, shape index: {}]   ;;  %s2480_s5 = inlined_call_operand.hbm [shape: f32[128,128], index: 5, kind: input, shape index: {}]   ;;  %s2481_s6 = inlined_call_operand.hbm [shape: f32[1,8,128], index: 6, kind: output, shape index: {}]  }
   0x1   :  { %12 = vsyncpa [#allocation6], 0 }
   0x2   :  { %13 = vsyncpa [#allocation4], 0  ;;  %s1930_s21 = smov [#allocation5]   ;;  %s1931_s23 = smov [#allocation2]  }
   0x3   :  { %s37_s22 = sshll.u32 %s1930_s21, 4  ;;  %s25_s24 = sshll.u32 %s1931_s23, 4  ;;  %s38_s22 = int_to_ptr.vmem [resolvable:$true] %s37_s22  ;;  %s1973_s24 = int_to_ptr.vmem [resolvable:$true] %s25_s24 }
   0x4   :  { %s1836_s27 = scalar_lea.hbm %s2479_s4, 2048 }
   0x5   :  { %p1837_p0 = scmp.ne.s32.totalorder %s2479_s4, %s1836_s27  ;;  %p1840_p1 = scmp.lt.u32.totalorder %s1836_s27, %s2479_s4 }
   0x7   :  { %p1842_p2 = pnand %p1840_p1, %p1837_p0 }
   0x9   :  { %1845 = shalt.err (!%p1842_p2)
}
   0xa   :  { %s1846_s8 = scalar_lea.vmem %s38_s22, 2048  ;;  %p1851_p4 = scmp.lt.s32.totalorder %s38_s22, %s38_s22 }
   0xb   :  { %p1847_p3 = scmp.ne.s32.totalorder %s38_s22, %s1846_s8  ;;  %p1852_p5 = scmp.lt.s32.totalorder %s1846_s8, %s1846_s8 }
   0xd   :  { %p1853_p6 = por %p1852_p5, %p1851_p4 }
   0xf   :  { %p1854_p7 = pnand %p1853_p6, %p1847_p3 }
  0x11   :  { %1857 = shalt.err (!%p1854_p7)
}
  0x12   :  { %s1932_s9 = smov 128   ;;  %s1933_s10 = smov 8  }
  0x13   :  { %43 = dma.hbm_to_vmem [thread:$0]  %s2479_s4, 2048, %s38_s22, [#allocation6], %s1932_s9, %s1932_s9, %s1933_s10  }
  0x14   :  { %s1858_s15 = scalar_lea.hbm %s2478_s3, 2048 }
  0x15   :  { %p1859_p8 = scmp.ne.s32.totalorder %s2478_s3, %s1858_s15  ;;  %p1862_p9 = scmp.lt.u32.totalorder %s1858_s15, %s2478_s3 }
  0x17   :  { %p1864_p10 = pnand %p1862_p9, %p1859_p8 }
  0x19   :  { %1867 = shalt.err (!%p1864_p10)
}
  0x1a   :  { %s1868_s20 = scalar_lea.vmem %s1973_s24, 2048  ;;  %p1873_p12 = scmp.lt.s32.totalorder %s1973_s24, %s1973_s24 }
  0x1b   :  { %p1869_p11 = scmp.ne.s32.totalorder %s1973_s24, %s1868_s20  ;;  %p1874_p13 = scmp.lt.s32.totalorder %s1868_s20, %s1868_s20 }
  0x1d   :  { %p1875_p0 = por %p1874_p13, %p1873_p12 }
  0x1f   :  { %p1876_p1 = pnand %p1875_p0, %p1869_p11 }
  0x21   :  { %1879 = shalt.err (!%p1876_p1)
}
  0x22   :  { %31 = dma.hbm_to_vmem [thread:$0]  %s2478_s3, 2048, %s1973_s24, [#allocation3], %s1932_s9, %s1932_s9, %s1933_s10  }
  0x23   :  { %s1934_s22 = smov [#allocation7]   ;;  %s1880_s27 = scalar_lea.hbm %s2480_s5, 2048 }
  0x24   :  { %s49_s23 = sshll.u32 %s1934_s22, 4  ;;  %p1881_p2 = scmp.ne.s32.totalorder %s2480_s5, %s1880_s27  ;;  %s50_s23 = int_to_ptr.vmem [resolvable:$true] %s49_s23 }
  0x25   :  { %p1884_p3 = scmp.lt.u32.totalorder %s1880_s27, %s2480_s5 }
  0x27   :  { %p1886_p4 = pnand %p1884_p3, %p1881_p2 }
  0x29   :  { %1889 = shalt.err (!%p1886_p4)
}
  0x2a   :  { %s1890_s8 = scalar_lea.vmem %s50_s23, 2048  ;;  %p1895_p6 = scmp.lt.s32.totalorder %s50_s23, %s50_s23 }
  0x2b   :  { %p1891_p5 = scmp.ne.s32.totalorder %s50_s23, %s1890_s8  ;;  %p1896_p7 = scmp.lt.s32.totalorder %s1890_s8, %s1890_s8 }
  0x2d   :  { %p1897_p8 = por %p1896_p7, %p1895_p6 }
  0x2f   :  { %p1898_p9 = pnand %p1897_p8, %p1891_p5 }
  0x31   :  { %1901 = shalt.err (!%p1898_p9)
}
  0x32   :  { %55 = dma.hbm_to_vmem [thread:$0]  %s2480_s5, 2048, %s50_s23, [#allocation6], %s1932_s9, %s1932_s9, %s1933_s10  }
  0x33   :  { %1924 = dma.done.wait [#allocation3], 2048  }
  0x34   :  { %1925 = vsyncadd [#allocation3], 4294965248 }
  0x35   :  { %1926 = dma.done.wait [#allocation6], 4096  }
  0x36   :  { %1927 = vsyncadd [#allocation6], 4294963200  ;;  %v2028_v0 = vld [vmem:[%s2477_s2 + $0x10] sm:$0xff]  ;;  %v2033_v1 = vld [vmem:[%s2477_s2] sm:$0xff]  ;;  %vm1549_vm0 = vcmask 1040384   ;;  %s1935_s5 = smov 1  }
  0x37   :  { %v2038_v2 = vld [vmem:[%s2477_s2 + $0x18] sm:$0xff]  ;;  %1288 = vrot.lane.b32.xlu1 %v2028_v0, %s1935_s5  ;;  %v1553_v3 = vrot.slane %v2028_v0, 7  ;;  %1284 = vrot.lane.b32.xlu0 %v2033_v1, %s1935_s5  ;;  %v1550_v4 = vrot.slane %v2033_v1, 7  ;;  %v2050_v6 = vld [vmem:[%s2477_s2 + $0x8] sm:$0xff]  ;;  %v872_v8 = vld [vmem:[#allocation7] sm:$0xff]  ;;  %vm1724_vm1 = vcmask 1046528  }
  0x38   :  { %v1555_v5 = vrot.slane %v2038_v2, 7  ;;  %v873_v7 = vld [vmem:[#allocation7 + $0x8] sm:$0xff]  ;;  %v1551_v9 = vrot.slane %v2050_v6, 7  ;;  %v1645_v11 = vrot.slane %v872_v8, 7  ;;  %v874_v12 = vld [vmem:[#allocation7 + $0x10] sm:$0xff]  ;;  %v2056_v13 = vld [vmem:[%s2477_s2 + $0x20] sm:$0xff] }
  0x39   :  { %v1646_v10 = vrot.slane %v873_v7, 7  ;;  %v1597_v15 = vsub.f32 %v2033_v1, %v1550_v4  ;;  %v1648_v16 = vrot.slane %v874_v12, 7  ;;  %v1557_v17 = vrot.slane %v2056_v13, 7  ;;  %v875_v26 = vld [vmem:[#allocation7 + $0x18] sm:$0xff]  ;;  %v2075_v27 = vld [vmem:[%s2477_s2 + $0x28] sm:$0xff]  ;;  %v2080_v36 = vld [vmem:[#allocation7 + $0x20] sm:$0xff] }
  0x3a   :  { %v1556_v14 = vsel %vm1549_vm0, %v1553_v3, %v1555_v5  ;;  %v1554_v19 = vsel %vm1549_vm0, %v1551_v9, %v1553_v3  ;;  %v1552_v20 = vsel %vm1549_vm0, %v1550_v4, %v1551_v9  ;;  %v1650_v30 = vrot.slane %v875_v26, 7  ;;  %v2085_v37 = vld [vmem:[%s2477_s2 + $0x30] sm:$0xff]  ;;  %v2097_v54 = vld [vmem:[#allocation7 + $0x28] sm:$0xff]  ;;  %v2102_v55 = vld [vmem:[%s2477_s2 + $0x38] sm:$0xff]  ;;  %s1937_s22 = smov [#allocation8]  }
  0x3b   :  { %v1600_v18 = vsub.f32 %v2038_v2, %v1556_v14  ;;  %v1647_v21 = vsel %vm1549_vm0, %v1645_v11, %v1646_v10  ;;  %1290 = vrot.lane.b32.xlu1 %v2038_v2, %s1935_s5  ;;  %v1599_v22 = vsub.f32 %v2028_v0, %v1554_v19  ;;  %1286 = vrot.lane.b32.xlu0 %v2050_v6, %s1935_s5  ;;  %v1613_v24 = vand.u32 2147483647, %v1597_v15  ;;  %v2122_v14 = vld [vmem:[%s2477_s2 + $0x40] sm:$0xff]  ;;  %v2124_v15 = vld [vmem:[#allocation7 + $0x38] sm:$0xff]  ;;  %s1808_s23 = sshll.u32 %s1937_s22, 4  ;;  %s1809_s23 = int_to_ptr.vmem [resolvable:$true] %s1808_s23 }
  0x3c   :  { %v1598_v23 = vsub.f32 %v2050_v6, %v1552_v20  ;;  %v1649_v25 = vsel %vm1549_vm0, %v1646_v10, %v1648_v16  ;;  %v1558_v29 = vsel %vm1549_vm0, %v1555_v5, %v1557_v17  ;;  %v1559_v31 = vrot.slane %v2075_v27, 7  ;;  %s1902_s27 = scalar_lea.vmem %s1809_s23, 128  ;;  %p1907_p11 = scmp.lt.s32.totalorder %s1809_s23, %s1809_s23 }
  0x3d   :  { %v1616_v28 = vand.u32 2147483647, %v1600_v18  ;;  %v1615_v32 = vand.u32 2147483647, %v1599_v22  ;;  %v1692_v34 = vmul.f32 %v1645_v11, %v1613_v24  ;;  %v1601_v35 = vsub.f32 %v2056_v13, %v1558_v29  ;;  %p1903_p10 = scmp.ne.s32.totalorder %s1809_s23, %s1902_s27  ;;  %p1908_p12 = scmp.lt.s32.totalorder %s1902_s27, %s1902_s27 }
  0x3e   :  { %v1614_v33 = vand.u32 2147483647, %v1598_v23  ;;  %v1651_v38 = vsel %vm1549_vm0, %v1648_v16, %v1650_v30  ;;  %v1560_v39 = vsel %vm1549_vm0, %v1557_v17, %v1559_v31  ;;  %v1652_v40 = vrot.slane %v2080_v36, 7  ;;  %v2129_v16 = vld [vmem:[%s2477_s2 + $0x48] sm:$0xff] }
  0x3f   :  { %v1561_v41 = vrot.slane %v2085_v37, 7  ;;  %1382 = vrot.lane.b32.xlu1 %v873_v7, %s1935_s5  ;;  %1380 = vrot.lane.b32.xlu0 %v872_v8, %s1935_s5  ;;  %v1725_v43 = vrot.slane %v1692_v34, 1  ;;  %v1694_v44 = vmul.f32 %v1649_v25, %v1615_v32  ;;  %v1617_v45 = vand.u32 2147483647, %v1601_v35  ;;  %v2114_v8 = vld [vmem:[#allocation7 + $0x30] sm:$0xff]  ;;  %p1909_p13 = por %p1908_p12, %p1907_p11 }
  0x40   :  { %v1693_v42 = vmul.f32 %v1647_v21, %v1614_v33  ;;  %v1695_v46 = vmul.f32 %v1651_v38, %v1616_v28  ;;  %v1602_v47 = vsub.f32 %v2075_v27, %v1560_v39  ;;  %v1653_v48 = vsel %vm1549_vm0, %v1650_v30, %v1652_v40  ;;  %v2134_v21 = vld [vmem:[#allocation7 + $0x40] sm:$0xff] }
  0x41   :  { %v1562_v49 = vsel %vm1549_vm0, %v1559_v31, %v1561_v41  ;;  %v1728_v51 = vrot.slane %v1694_v44, 1  ;;  %v1696_v52 = vmul.f32 %v1653_v48, %v1617_v45  ;;  %v1654_v58 = vrot.slane %v2097_v54, 7  ;;  %p1910_p0 = pnand %p1909_p13, %p1903_p10 }
  0x42   :  { %v1726_v50 = vrot.slane %v1693_v42, 1  ;;  %v1603_v53 = vsub.f32 %v2085_v37, %v1562_v49  ;;  %v1730_v56 = vrot.slane %v1695_v46, 1  ;;  %v1618_v57 = vand.u32 2147483647, %v1602_v47  ;;  %v881_v42 = vld [vmem:[#allocation7 + $0x48] sm:$0xff]  ;;  %v882_v47 = vld [vmem:[#allocation7 + $0x50] sm:$0xff] }
  0x43   :  { %v1563_v59 = vrot.slane %v2102_v55, 7  ;;  %1384 = vrot.lane.b32.xlu1 %v874_v12, %s1935_s5  ;;  %1292 = vrot.lane.b32.xlu0 %v2056_v13, %s1935_s5  ;;  %v1732_v62 = vrot.slane %v1696_v52, 1  ;;  %v1655_v5 = vsel %vm1549_vm0, %v1652_v40, %v1654_v58  ;;  %v1656_v12 = vrot.slane %v2114_v8, 7 }
  0x44   :  { %v1727_v60 = vsel %vm1724_vm1, %v1725_v43, %v1726_v50  ;;  %v1729_v61 = vsel %vm1724_vm1, %v1726_v50, %v1728_v51  ;;  %v1619_v63 = vand.u32 2147483647, %v1603_v53  ;;  %v1731_v4 = vsel %vm1724_vm1, %v1728_v51, %v1730_v56 }
  0x45   :  { %v1772_v3 = vadd.f32 %v1729_v61, %v1727_v60  ;;  %v1564_v7 = vsel %vm1549_vm0, %v1561_v41, %v1563_v59  ;;  %v1733_v9 = vsel %vm1724_vm1, %v1730_v56, %v1732_v62  ;;  %v1697_v10 = vmul.f32 %v1655_v5, %v1618_v57  ;;  %v2151_v41 = vld [vmem:[%s2477_s2 + $0x50] sm:$0xff] }
  0x46   :  { %v1604_v11 = vsub.f32 %v2102_v55, %v1564_v7  ;;  %v1565_v18 = vrot.slane %v2122_v14, 7  ;;  %v1658_v19 = vrot.slane %v2124_v15, 7  ;;  %v1567_v20 = vrot.slane %v2129_v16, 7 }
  0x47   :  { %v1773_v17 = vadd.f32 %v1772_v3, %v1731_v4  ;;  %1386 = vrot.lane.b32.xlu1 %v875_v26, %s1935_s5  ;;  %1294 = vrot.lane.b32.xlu0 %v2075_v27, %s1935_s5  ;;  %v1734_v22 = vrot.slane %v1697_v10, 1  ;;  %v1657_v24 = vsel %vm1549_vm0, %v1654_v58, %v1656_v12  ;;  %v1660_v25 = vrot.slane %v2134_v21, 7  ;;  %v884_v4 = vld [vmem:[#allocation7 + $0x60] sm:$0xff] }
  0x48   :  { %v1620_v23 = vand.u32 2147483647, %v1604_v11  ;;  %v1698_v29 = vmul.f32 %v1657_v24, %v1619_v63  ;;  %v1566_v30 = vsel %vm1549_vm0, %v1563_v59, %v1565_v18  ;;  %v1659_v31 = vsel %vm1549_vm0, %v1656_v12, %v1658_v19 }
  0x49   :  { %v1774_v28 = vadd.f32 %v1773_v17, %v1733_v9  ;;  %v1735_v32 = vsel %vm1724_vm1, %v1732_v62, %v1734_v22  ;;  %v1605_v33 = vsub.f32 %v2122_v14, %v1566_v30  ;;  %v1568_v34 = vsel %vm1549_vm0, %v1565_v18, %v1567_v20  ;;  %v883_v62 = vld [vmem:[#allocation7 + $0x58] sm:$0xff]  ;;  %v2238_v30 = vld [vmem:[%s2477_s2 + $0x70] sm:$0xff] }
  0x4a   :  { %v1699_v26 = vmul.f32 %v1659_v31, %v1620_v23  ;;  %v1736_v38 = vrot.slane %v1698_v29, 1  ;;  %v1606_v39 = vsub.f32 %v2129_v16, %v1568_v34  ;;  %v1661_v40 = vsel %vm1549_vm0, %v1658_v19, %v1660_v25  ;;  %v2222_v29 = vld [vmem:[%s2477_s2 + $0x60] sm:$0xff]  ;;  %v2246_v31 = vld [vmem:[%s2477_s2 + $0x78] sm:$0xff] }
  0x4b   :  { %v1775_v35 = vadd.f32 %v1774_v28, %v1735_v32  ;;  %1388 = vrot.lane.b32.xlu1 %v2080_v36, %s1935_s5  ;;  %1296 = vrot.lane.b32.xlu0 %v2085_v37, %s1935_s5  ;;  %v1621_v43 = vand.u32 2147483647, %v1605_v33  ;;  %v1569_v45 = vrot.slane %v2151_v41, 7  ;;  %v1662_v46 = vrot.slane %v881_v42, 7  ;;  %v2251_v32 = vld [vmem:[#allocation7 + $0x78] sm:$0xff]  ;;  %v840_v33 = vld [vmem:[#allocation2] sm:$0xff] }
  0x4c   :  { %v1738_v44 = vrot.slane %v1699_v26, 1  ;;  %v1737_v48 = vsel %vm1724_vm1, %v1734_v22, %v1736_v38  ;;  %v1622_v49 = vand.u32 2147483647, %v1606_v39  ;;  %v1664_v50 = vrot.slane %v882_v47, 7  ;;  %v2260_v26 = vld [vmem:[%s2475_s0] ss:$0 sm:$0xff] }
  0x4d   :  { %v1776_v51 = vadd.f32 %v1775_v35, %v1737_v48  ;;  %v1700_v53 = vmul.f32 %v1661_v40, %v1621_v43  ;;  %v1570_v36 = vsel %vm1549_vm0, %v1567_v20, %v1569_v45  ;;  %v1663_v57 = vsel %vm1549_vm0, %v1660_v25, %v1662_v46  ;;  %v885_v20 = vld [vmem:[#allocation7 + $0x68] sm:$0xff]  ;;  %v842_v35 = vld [vmem:[#allocation2 + $0x10] sm:$0xff]  ;;  %v844_v43 = vld [vmem:[#allocation2 + $0x20] sm:$0xff]  ;;  %s1936_s0 = smov 127  }
  0x4e   :  { %v1739_v52 = vsel %vm1724_vm1, %v1736_v38, %v1738_v44  ;;  %v1607_v56 = vsub.f32 %v2151_v41, %v1570_v36  ;;  %v1665_v58 = vsel %vm1549_vm0, %v1662_v46, %v1664_v50  ;;  %v1701_v61 = vmul.f32 %v1663_v57, %v1622_v49  ;;  %v841_v38 = vld [vmem:[#allocation2 + $0x8] sm:$0xff]  ;;  %v846_v48 = vld [vmem:[#allocation2 + $0x30] sm:$0xff] }
  0x4f   :  { %1390 = vrot.lane.b32.xlu1 %v2097_v54, %s1935_s5  ;;  %1298 = vrot.lane.b32.xlu0 %v2102_v55, %s1935_s5  ;;  %v1777_v59 = vadd.f32 %v1776_v51, %v1739_v52  ;;  %v1740_v60 = vrot.slane %v1700_v53, 1  ;;  %v1666_v3 = vrot.slane %v883_v62, 7  ;;  %v1668_v9 = vrot.slane %v884_v4, 7  ;;  %v847_v51 = vld [vmem:[#allocation2 + $0x38] sm:$0xff]  ;;  %v848_v52 = vld [vmem:[#allocation2 + $0x40] sm:$0xff]  ;;  %v850_v57 = vld [vmem:[#allocation2 + $0x50] sm:$0xff] }
  0x50   :  { %v1623_v63 = vand.u32 2147483647, %v1607_v56  ;;  %v1742_v7 = vrot.slane %v1701_v61, 1  ;;  %v1670_v23 = vrot.slane %v885_v20, 7  ;;  %v1122_v34 = vmul.f32 %v2260_v26, %v840_v33  ;;  %v849_v56 = vld [vmem:[#allocation2 + $0x48] sm:$0xff] }
  0x51   :  { %v1741_v5 = vsel %vm1724_vm1, %v1738_v44, %v1740_v60  ;;  %v2174_v12 = vsel %vm1549_vm0, %v1664_v50, %v1666_v3  ;;  %v2185_v19 = vsel %vm1549_vm0, %v1666_v3, %v1668_v9  ;;  %v1124_v39 = vmul.f32 %v2260_v26, %v842_v35 }
  0x52   :  { %v1778_v10 = vadd.f32 %v1777_v59, %v1741_v5  ;;  %v2171_v11 = vmul.f32 %v1665_v58, %v1623_v63  ;;  %v1743_v54 = vsel %vm1724_vm1, %v1740_v60, %v1742_v7  ;;  %v2200_v25 = vsel %vm1549_vm0, %v1668_v9, %v1670_v23  ;;  %v851_v60 = vld [vmem:[#allocation2 + $0x58] sm:$0xff] }
  0x53   :  { %1392 = vrot.lane.b32.xlu1 %v2114_v8, %s1935_s5  ;;  %1300 = vrot.lane.b32.xlu0 %v2122_v14, %s1935_s5  ;;  %v2192_v8 = vld [vmem:[#allocation7 + $0x70] sm:$0xff]  ;;  %v1123_v40 = vmul.f32 %v2260_v26, %v841_v38  ;;  %v1126_v46 = vmul.f32 %v2260_v26, %v844_v43  ;;  %v1128_v50 = vmul.f32 %v2260_v26, %v846_v48  ;;  %vm1186_vm3 = vcmask 7168  }
  0x54   :  { %v2181_v17 = vadd.f32 %v1778_v10, %v1743_v54  ;;  %v1744_v18 = vrot.slane %v2171_v11, 1  ;;  %v1672_v24 = vrot.slane %v2192_v8, 7  ;;  %v1129_v53 = vmul.f32 %v2260_v26, %v847_v51  ;;  %v865_v11 = vld [vmem:[#allocation5 + $0x48] sm:$0xff] }
  0x55   :  { %v1130_v36 = vmul.f32 %v2260_v26, %v848_v52  ;;  %v1131_v58 = vmul.f32 %v2260_v26, %v849_v56  ;;  %v1132_v59 = vmul.f32 %v2260_v26, %v850_v57  ;;  %v1133_v61 = vmul.f32 %v2260_v26, %v851_v60 }
  0x56   :  { %v2190_v22 = vsel %vm1724_vm1, %v1742_v7, %v1744_v18  ;;  %v2205_v28 = vsel %vm1549_vm0, %v1670_v23, %v1672_v24  ;;  %vm1508_vm4 = vcmask 1039360  }
  0x57   :  { %1394 = vrot.lane.b32.xlu1 %v2124_v15, %s1935_s5  ;;  %1302 = vrot.lane.b32.xlu0 %v2129_v16, %s1935_s5  ;;  %v2214_v15 = vld [vmem:[%s2477_s2 + $0x58] sm:$0xff] }
  0x5b   :  { %1396 = vrot.lane.b32.xlu1 %v2134_v21, %s1935_s5  ;;  %1304 = vrot.lane.b32.xlu0 %v2151_v41, %s1935_s5  ;;  %v2230_v21 = vld [vmem:[%s2477_s2 + $0x68] sm:$0xff] }
  0x5f   :  { %1398 = vrot.lane.b32.xlu1 %v881_v42, %s1935_s5  ;;  %1306 = vrot.lane.b32.xlu0 %v2214_v15, %s1935_s5  ;;  %v843_v42 = vld [vmem:[#allocation2 + $0x18] sm:$0xff] }
  0x60   :  { %v1125_v44 = vmul.f32 %v2260_v26, %v843_v42 }
  0x63   :  { %1400 = vrot.lane.b32.xlu1 %v882_v47, %s1935_s5  ;;  %1308 = vrot.lane.b32.xlu0 %v2222_v29, %s1935_s5  ;;  %v845_v47 = vld [vmem:[#allocation2 + $0x28] sm:$0xff] }
  0x64   :  { %v1127_v49 = vmul.f32 %v2260_v26, %v845_v47  ;;  %v854_v47 = vld [vmem:[#allocation2 + $0x70] sm:$0xff] }
  0x67   :  { %1402 = vrot.lane.b32.xlu1 %v883_v62, %s1935_s5  ;;  %1310 = vrot.lane.b32.xlu0 %v2230_v21, %s1935_s5 }
  0x6b   :  { %1404 = vrot.lane.b32.xlu1 %v884_v4, %s1935_s5  ;;  %1312 = vrot.lane.b32.xlu0 %v2238_v30, %s1935_s5 }
  0x6f   :  { %1406 = vrot.lane.b32.xlu1 %v885_v20, %s1935_s5  ;;  %1314 = vrot.lane.b32.xlu0 %v2246_v31, %s1935_s5 }
  0x73   :  { %1410 = vrot.lane.b32.xlu1 %v2251_v32, %s1935_s5  ;;  %1408 = vrot.lane.b32.xlu0 %v2192_v8, %s1935_s5  ;;  %v866_v8 = vld [vmem:[#allocation5 + $0x50] sm:$0xff] }
  0x92   :  { %1138 = vadd.xlane.f32.xlu0 %v1122_v34 }
  0x96   :  { %1142 = vadd.xlane.f32.xlu0 %v1124_v39 }
  0x97   :  { %1140 = vadd.xlane.f32.xlu1 %v1123_v40 }
  0x9a   :  { %1144 = vadd.xlane.f32.xlu0 %v1125_v44  ;;  %v853_v44 = vld [vmem:[#allocation2 + $0x68] sm:$0xff] }
  0x9b   :  { %1146 = vadd.xlane.f32.xlu1 %v1126_v46  ;;  %v1135_v46 = vmul.f32 %v2260_v26, %v853_v44 }
  0x9e   :  { %1148 = vadd.xlane.f32.xlu0 %v1127_v49  ;;  %v1136_v49 = vmul.f32 %v2260_v26, %v854_v47  ;;  %v859_v47 = vld [vmem:[#allocation5 + $0x18] sm:$0xff] }
  0x9f   :  { %1150 = vadd.xlane.f32.xlu1 %v1128_v50 }
  0xa2   :  { %1152 = vadd.xlane.f32.xlu0 %v1129_v53 }
  0xa3   :  { %1154 = vadd.xlane.f32.xlu1 %v1130_v36 }
  0xa6   :  { %1156 = vadd.xlane.f32.xlu0 %v1131_v58 }
  0xa7   :  { %1158 = vadd.xlane.f32.xlu1 %v1132_v59 }
  0xa9   :  { %v1285_v62 = vpop.permute.xlu0 %1284  ;;  %v1289_v63 = vpop.permute.xlu1 %1288 }
  0xaa   :  { %1160 = vadd.xlane.f32.xlu0 %v1133_v61  ;;  %v1332_v4 = vsub.f32 %v2033_v1, %v1285_v62  ;;  %v1334_v33 = vsub.f32 %v2028_v0, %v1289_v63  ;;  %v852_v1 = vld [vmem:[#allocation2 + $0x60] sm:$0xff] }
  0xac   :  { %v1348_v5 = vand.u32 2147483647, %v1332_v4  ;;  %v1350_v38 = vand.u32 2147483647, %v1334_v33  ;;  %v856_v33 = vld [vmem:[#allocation5] sm:$0xff] }
  0xad   :  { %v1287_v3 = vpop.permute.xlu0 %1286  ;;  %v1291_v7 = vpop.permute.xlu1 %1290 }
  0xae   :  { %v1333_v10 = vsub.f32 %v2050_v6, %v1287_v3  ;;  %v1134_v6 = vmul.f32 %v2260_v26, %v852_v1  ;;  %v1335_v50 = vsub.f32 %v2038_v2, %v1291_v7  ;;  %v906_v1 = vlaneseq }
  0xb0   :  { %v1349_v23 = vand.u32 2147483647, %v1333_v10  ;;  %v1351_v53 = vand.u32 2147483647, %v1335_v50  ;;  %v907_v50 = vshrl.u32 %v906_v1, 7 }
  0xb1   :  { %v1381_v9 = vpop.permute.xlu0 %1380  ;;  %v1383_v20 = vpop.permute.xlu1 %1382 }
  0xb2   :  { %v1428_v54 = vmul.f32 %v1381_v9, %v1348_v5  ;;  %v1429_v34 = vmul.f32 %v1383_v20, %v1349_v23 }
  0xb5   :  { %v1385_v35 = vpop.permute.xlu1 %1384  ;;  %v1293_v40 = vpop.permute.xlu0 %1292 }
  0xb6   :  { %v1430_v39 = vmul.f32 %v1385_v35, %v1350_v38  ;;  %v1336_v58 = vsub.f32 %v2056_v13, %v1293_v40  ;;  %v1228_v35 = vmul.f32 %v2260_v26, %v856_v33  ;;  %v858_v38 = vld [vmem:[#allocation5 + $0x10] sm:$0xff] }
  0xb7   :  { %v1230_v44 = vmul.f32 %v2260_v26, %v858_v38 }
  0xb8   :  { %1460 = vrot.lane.b32.xlu1 %v1428_v54, %s1936_s0  ;;  %v1352_v61 = vand.u32 2147483647, %v1336_v58  ;;  %v1231_v58 = vmul.f32 %v2260_v26, %v859_v47  ;;  %v1579_v47 = vrot.slane %v2246_v31, 7 }
  0xb9   :  { %v1387_v42 = vpop.permute.xlu1 %1386  ;;  %v1295_v43 = vpop.permute.xlu0 %1294 }
  0xba   :  { %v1431_v36 = vmul.f32 %v1387_v42, %v1351_v53  ;;  %v1337_v62 = vsub.f32 %v2075_v27, %v1295_v43 }
  0xbc   :  { %v1353_v4 = vand.u32 2147483647, %v1337_v62 }
  0xbd   :  { %v1389_v0 = vpop.permute.xlu1 %1388  ;;  %v1297_v48 = vpop.permute.xlu0 %1296 }
  0xbe   :  { %v1432_v2 = vmul.f32 %v1389_v0, %v1352_v61  ;;  %v1338_v5 = vsub.f32 %v2085_v37, %v1297_v48  ;;  %v860_v61 = vld [vmem:[#allocation5 + $0x20] sm:$0xff] }
  0xc0   :  { %1462 = vrot.lane.b32.xlu0 %v1429_v34, %s1936_s0  ;;  %v1354_v7 = vand.u32 2147483647, %v1338_v5  ;;  %v857_v34 = vld [vmem:[#allocation5 + $0x8] sm:$0xff] }
  0xc1   :  { %v1391_v51 = vpop.permute.xlu1 %1390  ;;  %v1299_v52 = vpop.permute.xlu0 %1298  ;;  %v1229_v37 = vmul.f32 %v2260_v26, %v857_v34 }
  0xc2   :  { %v1433_v9 = vmul.f32 %v1391_v51, %v1353_v4  ;;  %v1339_v10 = vsub.f32 %v2102_v55, %v1299_v52  ;;  %v1571_v55 = vrot.slane %v2214_v15, 7  ;;  %v855_v51 = vld [vmem:[#allocation2 + $0x78] sm:$0xff]  ;;  %v1577_v52 = vrot.slane %v2238_v30, 7 }
  0xc4   :  { %1464 = vrot.lane.b32.xlu0 %v1430_v39, %s1936_s0  ;;  %v1355_v13 = vand.u32 2147483647, %v1339_v10  ;;  %v1573_v39 = vrot.slane %v2222_v29, 7  ;;  %v1572_v0 = vsel %vm1549_vm0, %v1569_v45, %v1571_v55 }
  0xc5   :  { %v1393_v56 = vpop.permute.xlu1 %1392  ;;  %v1301_v57 = vpop.permute.xlu0 %1300  ;;  %v1608_v45 = vsub.f32 %v2214_v15, %v1572_v0 }
  0xc6   :  { %v1434_v23 = vmul.f32 %v1393_v56, %v1354_v7  ;;  %v1340_v27 = vsub.f32 %v2122_v14, %v1301_v57  ;;  %v1574_v48 = vsel %vm1549_vm0, %v1571_v55, %v1573_v39  ;;  %v1232_v7 = vmul.f32 %v2260_v26, %v860_v61 }
  0xc7   :  { %v1609_v62 = vsub.f32 %v2222_v29, %v1574_v48  ;;  %v1624_v10 = vand.u32 2147483647, %v1608_v45 }
  0xc8   :  { %v1356_v42 = vand.u32 2147483647, %v1340_v27 }
  0xc9   :  { %v1395_v59 = vpop.permute.xlu1 %1394  ;;  %v1303_v60 = vpop.permute.xlu0 %1302  ;;  %v1625_v27 = vand.u32 2147483647, %v1609_v62 }
  0xca   :  { %v1435_v43 = vmul.f32 %v1395_v59, %v1355_v13  ;;  %v1341_v14 = vsub.f32 %v2129_v16, %v1303_v60  ;;  %v1137_v60 = vmul.f32 %v2260_v26, %v855_v51 }
  0xcc   :  { %v1357_v53 = vand.u32 2147483647, %v1341_v14 }
  0xcd   :  { %v1397_v63 = vpop.permute.xlu1 %1396  ;;  %v1305_v3 = vpop.permute.xlu0 %1304 }
  0xce   :  { %v1436_v16 = vmul.f32 %v1397_v63, %v1356_v42  ;;  %v922_v63 = vadd.s32 120, %v907_v50  ;;  %v1704_v42 = vmul.f32 %v2185_v19, %v1625_v27 }
  0xd0   :  { %vm1067_vm2 = vcmp.lt.s32.totalorder %v922_v63, 127  ;;  %v1748_v51 = vrot.slane %v1704_v42, 1  ;;  %v868_v42 = vld [vmem:[#allocation5 + $0x60] sm:$0xff] }
  0xd1   :  { %v1399_v54 = vpop.permute.xlu1 %1398  ;;  %v2290_v20 = vpop.permute.xlu0 %1306  ;;  %v1115_v14 = vsel %vm1067_vm2, %v2251_v32, 0.0  ;;  %v863_v32 = vld [vmem:[#allocation5 + $0x38] sm:$0xff] }
  0xd5   :  { %v1401_v40 = vpop.permute.xlu1 %1400 }
  0xd9   :  { %v2309_v56 = vpop.permute.xlu1 %1402 }
  0xdc   :  { %1162 = vadd.xlane.f32.xlu1 %v1134_v6  ;;  %v1309_v6 = vpop.permute.xlu0 %1308 }
  0xdd   :  { %v1344_v5 = vsub.f32 %v2222_v29, %v1309_v6  ;;  %v1405_v34 = vpop.permute.xlu1 %1404  ;;  %v862_v6 = vld [vmem:[#allocation5 + $0x30] sm:$0xff] }
  0xde   :  { %v1234_v48 = vmul.f32 %v2260_v26, %v862_v6 }
  0xe0   :  { %v1311_v57 = vpop.permute.xlu0 %1310 }
  0xe1   :  { %v1345_v29 = vsub.f32 %v2230_v21, %v1311_v57  ;;  %v1407_v0 = vpop.permute.xlu1 %1406 }
  0xe3   :  { %1164 = vadd.xlane.f32.xlu0 %v1135_v46  ;;  %v1244_v46 = vadd.f32 %v1229_v37, %v1228_v35 }
  0xe4   :  { %v1313_v35 = vpop.permute.xlu0 %1312 }
  0xe5   :  { %v1245_v59 = vadd.f32 %v1244_v46, %v1230_v44  ;;  %v1361_v44 = vand.u32 2147483647, %v1345_v29  ;;  %v1238_v29 = vmul.f32 %v2260_v26, %v866_v8 }
  0xe7   :  { %1166 = vadd.xlane.f32.xlu0 %v1136_v49  ;;  %v1575_v49 = vrot.slane %v2230_v21, 7 }
  0xe9   :  { %v1576_v4 = vsel %vm1549_vm0, %v1573_v39, %v1575_v49  ;;  %v1703_v39 = vmul.f32 %v2174_v12, %v1624_v10  ;;  %v1315_v12 = vpop.permute.xlu0 %1314 }
  0xea   :  { %v1610_v13 = vsub.f32 %v2230_v21, %v1576_v4  ;;  %v1346_v21 = vsub.f32 %v2238_v30, %v1313_v35  ;;  %v1347_v57 = vsub.f32 %v2246_v31, %v1315_v12  ;;  %v871_v12 = vld [vmem:[#allocation5 + $0x78] sm:$0xff] }
  0xeb   :  { %v1746_v50 = vrot.slane %v1703_v39, 1 }
  0xec   :  { %v1626_v1 = vand.u32 2147483647, %v1610_v13 }
  0xed   :  { %1466 = vrot.lane.b32.xlu1 %v1431_v36, %s1936_s0  ;;  %v1342_v36 = vsub.f32 %v2151_v41, %v1305_v3  ;;  %v1578_v41 = vsel %vm1549_vm0, %v1575_v49, %v1577_v52  ;;  %v1747_v4 = vsel %vm1724_vm1, %v1744_v18, %v1746_v50 }
  0xee   :  { %v1611_v33 = vsub.f32 %v2238_v30, %v1578_v41  ;;  %v1705_v19 = vmul.f32 %v2200_v25, %v1626_v1  ;;  %v1580_v25 = vsel %vm1549_vm0, %v1577_v52, %v1579_v47  ;;  %v1749_v52 = vsel %vm1724_vm1, %v1746_v50, %v1748_v51 }
  0xef   :  { %v1358_v3 = vand.u32 2147483647, %v1342_v36  ;;  %v1441_v36 = vmul.f32 %v1407_v0, %v1361_v44  ;;  %v1612_v62 = vsub.f32 %v2246_v31, %v1580_v25  ;;  %v891_v25 = vld [vmem:[%s2476_s1 + $0x10] sm:$0xff] }
  0xf0   :  { %v1750_v61 = vrot.slane %v1705_v19, 1 }
  0xf1   :  { %v1438_v37 = vmul.f32 %v1401_v40, %v1358_v3  ;;  %v1343_v40 = vsub.f32 %v2214_v15, %v2290_v20  ;;  %v1363_v3 = vand.u32 2147483647, %v1347_v57  ;;  %v1628_v30 = vand.u32 2147483647, %v1612_v62 }
  0xf3   :  { %v1359_v20 = vand.u32 2147483647, %v1343_v40  ;;  %v869_v40 = vld [vmem:[#allocation5 + $0x68] sm:$0xff] }
  0xf4   :  { %v1241_v44 = vmul.f32 %v2260_v26, %v869_v40 }
  0xfd   :  { %1468 = vrot.lane.b32.xlu0 %v1432_v2, %s1936_s0  ;;  %v1437_v2 = vmul.f32 %v1399_v54, %v1357_v53  ;;  %v1360_v54 = vand.u32 2147483647, %v1344_v5  ;;  %v1674_v53 = vrot.slane %v1115_v14, 7  ;;  %v1439_v5 = vmul.f32 %v2309_v56, %v1359_v20 }
  0xff   :  { %v1440_v46 = vmul.f32 %v1405_v34, %v1360_v54  ;;  %v1675_v31 = vsel %vm1549_vm0, %v1672_v24, %v1674_v53 }
 0x100   :  { %v1707_v18 = vmul.f32 %v1675_v31, %v1628_v30  ;;  %v894_v31 = vld [vmem:[%s2476_s1 + $0x28] sm:$0xff] }
 0x101   :  { %1470 = vrot.lane.b32.xlu0 %v1433_v9, %s1936_s0  ;;  %v1246_v9 = vadd.f32 %v1245_v59, %v1231_v58  ;;  %v1409_v58 = vpop.permute.xlu0 %1408  ;;  %v1235_v59 = vmul.f32 %v2260_v26, %v863_v32 }
 0x103   :  { %v1247_v55 = vadd.f32 %v1246_v9, %v1232_v7  ;;  %v1751_v9 = vsel %vm1724_vm1, %v1748_v51, %v1750_v61 }
 0x105   :  { %1472 = vrot.lane.b32.xlu0 %v1434_v23, %s1936_s0  ;;  %v861_v23 = vld [vmem:[#allocation5 + $0x28] sm:$0xff] }
 0x106   :  { %v1233_v38 = vmul.f32 %v2260_v26, %v861_v23  ;;  %v1754_v23 = vrot.slane %v1707_v18, 1 }
 0x108   :  { %v1248_v49 = vadd.f32 %v1247_v55, %v1233_v38  ;;  %v867_v55 = vld [vmem:[#allocation5 + $0x58] sm:$0xff] }
 0x109   :  { %1474 = vrot.lane.b32.xlu0 %v1435_v43, %s1936_s0  ;;  %v1627_v43 = vand.u32 2147483647, %v1611_v33  ;;  %v1237_v33 = vmul.f32 %v2260_v26, %v865_v11  ;;  %v1239_v1 = vmul.f32 %v2260_v26, %v867_v55 }
 0x10a   :  { %v1249_v45 = vadd.f32 %v1248_v49, %v1234_v48  ;;  %v1243_v49 = vmul.f32 %v2260_v26, %v871_v12 }
 0x10b   :  { %v1706_v15 = vmul.f32 %v2205_v28, %v1627_v43  ;;  %v864_v28 = vld [vmem:[#allocation5 + $0x40] sm:$0xff]  ;;  %v1240_v43 = vmul.f32 %v2260_v26, %v868_v42 }
 0x10c   :  { %v1250_v7 = vadd.f32 %v1249_v45, %v1235_v59  ;;  %v897_v42 = vld [vmem:[%s2476_s1 + $0x40] sm:$0xff] }
 0x10d   :  { %1476 = vrot.lane.b32.xlu0 %v1436_v16, %s1936_s0  ;;  %v1362_v16 = vand.u32 2147483647, %v1346_v21  ;;  %v1752_v63 = vrot.slane %v1706_v15, 1  ;;  %v870_v21 = vld [vmem:[#allocation5 + $0x70] sm:$0xff] }
 0x10e   :  { %v1242_v47 = vmul.f32 %v2260_v26, %v870_v21 }
 0x10f   :  { %v1753_v56 = vsel %vm1724_vm1, %v1750_v61, %v1752_v63  ;;  %v1755_v24 = vsel %vm1724_vm1, %v1752_v63, %v1754_v23  ;;  %v892_v63 = vld [vmem:[%s2476_s1 + $0x18] sm:$0xff] }
 0x111   :  { %1168 = vadd.xlane.f32.xlu1 %v1137_v60  ;;  %1478 = vrot.lane.b32.xlu0 %v1437_v2, %s1936_s0  ;;  %v1780_v60 = vadd.f32 %v2181_v17, %v2190_v22  ;;  %v1442_v2 = vmul.f32 %v1409_v58, %v1362_v16  ;;  %v1411_v17 = vpop.permute.xlu1 %1410  ;;  %v1236_v22 = vmul.f32 %v2260_v26, %v864_v28  ;;  %v889_v58 = vld [vmem:[%s2476_s1] sm:$0xff]  ;;  %v890_v26 = vld [vmem:[%s2476_s1 + $0x8] sm:$0xff] }
 0x112   :  { %v1443_v13 = vmul.f32 %v1411_v17, %v1363_v3 }
 0x113   :  { %v1781_v41 = vadd.f32 %v1780_v60, %v1747_v4  ;;  %v1251_v34 = vadd.f32 %v1250_v7, %v1236_v22  ;;  %v893_v22 = vld [vmem:[%s2476_s1 + $0x20] sm:$0xff] }
 0x115   :  { %1480 = vrot.lane.b32.xlu0 %v1438_v37, %s1936_s0  ;;  %v1782_v10 = vadd.f32 %v1781_v41, %v1749_v52  ;;  %v1786_v37 = vsel %vm1724_vm1, %v1754_v23, 0.0  ;;  %v1252_v38 = vadd.f32 %v1251_v34, %v1237_v33  ;;  %v895_v33 = vld [vmem:[%s2476_s1 + $0x30] sm:$0xff] }
 0x117   :  { %v1783_v27 = vadd.f32 %v1782_v10, %v1751_v9  ;;  %v1253_v6 = vadd.f32 %v1252_v38, %v1238_v29 }
 0x119   :  { %1484 = vrot.lane.b32.xlu0 %v1440_v46, %s1936_s0  ;;  %v1784_v35 = vadd.f32 %v1783_v27, %v1753_v56  ;;  %v1254_v14 = vadd.f32 %v1253_v6, %v1239_v1 }
 0x11b   :  { %v1785_v54 = vadd.f32 %v1784_v35, %v1755_v24  ;;  %v1255_v46 = vadd.f32 %v1254_v14, %v1240_v43  ;;  %v896_v24 = vld [vmem:[%s2476_s1 + $0x38] sm:$0xff]  ;;  %v898_v14 = vld [vmem:[%s2476_s1 + $0x48] sm:$0xff] }
 0x11d   :  { %1486 = vrot.lane.b32.xlu0 %v1441_v36, %s1936_s0  ;;  %v2366_v39 = vadd.f32 %v1786_v37, %v1785_v54  ;;  %v1256_v0 = vadd.f32 %v1255_v46, %v1241_v44 }
 0x11f   :  { %v1139_v48 = vpop.xlane.xlu0 %1138  ;;  %v1257_v50 = vadd.f32 %v1256_v0, %v1242_v47 }
 0x120   :  { %v1170_v59 = vmul.f32 %v1139_v48, %v889_v58 }
 0x121   :  { %1488 = vrot.lane.b32.xlu0 %v1442_v2, %s1936_s0  ;;  %v1258_v19 = vadd.f32 %v1257_v50, %v1243_v49  ;;  %v899_v50 = vld [vmem:[%s2476_s1 + $0x50] sm:$0xff] }
 0x122   :  { %1482 = vrot.lane.b32.xlu1 %v1439_v5, %s1936_s0  ;;  %v1187_v28 = vsel %vm1186_vm3, %v1170_v59, 0.0 }
 0x123   :  { %v1143_v32 = vpop.xlane.xlu0 %1142 }
 0x124   :  { %v1141_v36 = vpop.xlane.xlu1 %1140  ;;  %v1172_v62 = vmul.f32 %v1143_v32, %v891_v25 }
 0x125   :  { %1490 = vrot.lane.b32.xlu0 %v1443_v13, %s1936_s0  ;;  %v1171_v45 = vmul.f32 %v1141_v36, %v890_v26 }
 0x126   :  { %v1190_v30 = vsel %vm1186_vm3, %v1172_v62, 0.0 }
 0x127   :  { %v1145_v51 = vpop.xlane.xlu0 %1144  ;;  %v1188_v4 = vsel %vm1186_vm3, %v1171_v45, 0.0  ;;  %v901_v45 = vld [vmem:[%s2476_s1 + $0x60] sm:$0xff] }
 0x128   :  { %v1147_v60 = vpop.xlane.xlu1 %1146  ;;  %v1189_v3 = vadd.f32 %v1188_v4, %v1187_v28  ;;  %v1173_v52 = vmul.f32 %v1145_v51, %v892_v63  ;;  %v902_v28 = vld [vmem:[%s2476_s1 + $0x68] sm:$0xff] }
 0x129   :  { %v1174_v9 = vmul.f32 %v1147_v60, %v893_v22 }
 0x12a   :  { %v1191_v17 = vadd.f32 %v1190_v30, %v1189_v3  ;;  %v1192_v7 = vsel %vm1186_vm3, %v1173_v52, 0.0 }
 0x12b   :  { %v1149_v53 = vpop.xlane.xlu0 %1148  ;;  %v1194_v23 = vsel %vm1186_vm3, %v1174_v9, 0.0 }
 0x12c   :  { %v1151_v2 = vpop.xlane.xlu1 %1150  ;;  %v1193_v10 = vadd.f32 %v1192_v7, %v1191_v17  ;;  %v1175_v13 = vmul.f32 %v1149_v53, %v894_v31 }
 0x12d   :  { %v1176_v37 = vmul.f32 %v1151_v2, %v895_v33  ;;  %v903_v2 = vld [vmem:[%s2476_s1 + $0x70] sm:$0xff] }
 0x12e   :  { %v1195_v27 = vadd.f32 %v1194_v23, %v1193_v10  ;;  %v1196_v8 = vsel %vm1186_vm3, %v1175_v13, 0.0 }
 0x12f   :  { %v1153_v15 = vpop.xlane.xlu0 %1152  ;;  %v1198_v1 = vsel %vm1186_vm3, %v1176_v37, 0.0 }
 0x130   :  { %v1155_v11 = vpop.xlane.xlu1 %1154  ;;  %v1197_v54 = vadd.f32 %v1196_v8, %v1195_v27  ;;  %v1177_v29 = vmul.f32 %v1153_v15, %v896_v24  ;;  %v900_v15 = vld [vmem:[%s2476_s1 + $0x58] sm:$0xff] }
 0x131   :  { %v1178_v46 = vmul.f32 %v1155_v11, %v897_v42 }
 0x132   :  { %v1199_v6 = vadd.f32 %v1198_v1, %v1197_v54  ;;  %v1200_v43 = vsel %vm1186_vm3, %v1177_v29, 0.0 }
 0x133   :  { %v1157_v20 = vpop.xlane.xlu0 %1156  ;;  %v1202_v12 = vsel %vm1186_vm3, %v1178_v46, 0.0 }
 0x134   :  { %v1159_v34 = vpop.xlane.xlu1 %1158  ;;  %v1201_v21 = vadd.f32 %v1200_v43, %v1199_v6  ;;  %v1179_v47 = vmul.f32 %v1157_v20, %v898_v14 }
 0x135   :  { %v1180_v58 = vmul.f32 %v1159_v34, %v899_v50 }
 0x136   :  { %v1203_v49 = vadd.f32 %v1202_v12, %v1201_v21  ;;  %v1204_v32 = vsel %vm1186_vm3, %v1179_v47, 0.0 }
 0x137   :  { %v2373_v16 = vpop.xlane.xlu0 %1160  ;;  %v1206_v62 = vsel %vm1186_vm3, %v1180_v58, 0.0 }
 0x138   :  { %v1461_v38 = vpop.permute.xlu1 %1460  ;;  %v1205_v26 = vadd.f32 %v1204_v32, %v1203_v49  ;;  %v1181_v25 = vmul.f32 %v2373_v16, %v900_v15 }
 0x139   :  { %v1509_v51 = vsel %vm1508_vm4, %v1461_v38, 0.0 }
 0x13a   :  { %v1207_v3 = vadd.f32 %v1206_v62, %v1205_v26  ;;  %v1208_v16 = vsel %vm1186_vm3, %v1181_v25, 0.0 }
 0x13b   :  { %v1463_v57 = vpop.permute.xlu0 %1462 }
 0x13c   :  { %v1510_v48 = vsel %vm1508_vm4, %v1463_v57, 0.0  ;;  %v1209_v9 = vadd.f32 %v1208_v16, %v1207_v3 }
 0x13d   :  { %v1511_v20 = vadd.f32 %v1510_v48, %v1509_v51 }
 0x13f   :  { %v1465_v61 = vpop.permute.xlu0 %1464 }
 0x140   :  { %v1512_v53 = vsel %vm1508_vm4, %v1465_v61, 0.0 }
 0x141   :  { %v1513_v59 = vadd.f32 %v1512_v53, %v1511_v20 }
 0x144   :  { %1259 = vadd.xlane.f32.xlu0 %v1258_v19 }
 0x169   :  { %v1163_v40 = vpop.xlane.xlu1 %1162 }
 0x16a   :  { %v1182_v4 = vmul.f32 %v1163_v40, %v901_v45 }
 0x16c   :  { %v1210_v31 = vsel %vm1186_vm3, %v1182_v4, 0.0 }
 0x16d   :  { %v1467_v19 = vpop.permute.xlu1 %1466  ;;  %v1211_v23 = vadd.f32 %v1210_v31, %v1209_v9 }
 0x16e   :  { %v1514_v57 = vsel %vm1508_vm4, %v1467_v19, 0.0 }
 0x16f   :  { %v1515_v61 = vadd.f32 %v1514_v57, %v1513_v59 }
 0x170   :  { %v2389_v41 = vpop.xlane.xlu0 %1164 }
 0x171   :  { %v1183_v17 = vmul.f32 %v2389_v41, %v902_v28  ;;  %v904_v41 = vld [vmem:[%s2476_s1 + $0x78] sm:$0xff] }
 0x173   :  { %v1212_v13 = vsel %vm1186_vm3, %v1183_v17, 0.0 }
 0x174   :  { %v2392_v5 = vpop.xlane.xlu0 %1166 }
 0x175   :  { %v1184_v11 = vmul.f32 %v2392_v5, %v903_v2  ;;  %v1213_v5 = vadd.f32 %v1212_v13, %v1211_v23 }
 0x177   :  { %v1214_v34 = vsel %vm1186_vm3, %v1184_v11, 0.0 }
 0x178   :  { %v1469_v18 = vpop.permute.xlu0 %1468  ;;  %v1215_v38 = vadd.f32 %v1214_v34, %v1213_v5 }
 0x179   :  { %v1516_v60 = vsel %vm1508_vm4, %v1469_v18, 0.0 }
 0x17a   :  { %v1517_v30 = vadd.f32 %v1516_v60, %v1515_v61 }
 0x17c   :  { %v1471_v56 = vpop.permute.xlu0 %1470 }
 0x17d   :  { %v1518_v63 = vsel %vm1508_vm4, %v1471_v56, 0.0 }
 0x17e   :  { %v1519_v7 = vadd.f32 %v1518_v63, %v1517_v30 }
 0x180   :  { %v1473_v35 = vpop.permute.xlu0 %1472 }
 0x181   :  { %v1520_v22 = vsel %vm1508_vm4, %v1473_v35, 0.0 }
 0x182   :  { %v1521_v10 = vadd.f32 %v1520_v22, %v1519_v7 }
 0x184   :  { %v1475_v55 = vpop.permute.xlu0 %1474 }
 0x185   :  { %v1522_v18 = vsel %vm1508_vm4, %v1475_v55, 0.0 }
 0x186   :  { %v1523_v27 = vadd.f32 %v1522_v18, %v1521_v10 }
 0x188   :  { %v1477_v44 = vpop.permute.xlu0 %1476 }
 0x189   :  { %v1524_v56 = vsel %vm1508_vm4, %v1477_v44, 0.0 }
 0x18a   :  { %v1525_v24 = vadd.f32 %v1524_v56, %v1523_v27 }
 0x18c   :  { %v1479_v0 = vpop.permute.xlu0 %1478 }
 0x18d   :  { %v1526_v8 = vsel %vm1508_vm4, %v1479_v0, 0.0 }
 0x18e   :  { %v1527_v29 = vadd.f32 %v1526_v8, %v1525_v24 }
 0x190   :  { %v1481_v36 = vpop.permute.xlu0 %1480 }
 0x191   :  { %v1528_v37 = vsel %vm1508_vm4, %v1481_v36, 0.0 }
 0x192   :  { %v1529_v1 = vadd.f32 %v1528_v37, %v1527_v29 }
 0x194   :  { %v1485_v52 = vpop.permute.xlu0 %1484 }
 0x195   :  { %v1532_v44 = vsel %vm1508_vm4, %v1485_v52, 0.0 }
 0x198   :  { %v1487_v33 = vpop.permute.xlu0 %1486 }
 0x199   :  { %v1534_v21 = vsel %vm1508_vm4, %v1487_v33, 0.0 }
 0x19c   :  { %v1489_v6 = vpop.permute.xlu0 %1488 }
 0x19d   :  { %v1536_v12 = vsel %vm1508_vm4, %v1489_v6, 0.0 }
 0x19e   :  { %v1169_v35 = vpop.xlane.xlu1 %1168 }
 0x19f   :  { %v1185_v54 = vmul.f32 %v1169_v35, %v904_v41 }
 0x1a0   :  { %v1491_v47 = vpop.permute.xlu0 %1490 }
 0x1a1   :  { %v1216_v55 = vsel %vm1186_vm3, %v1185_v54, 0.0  ;;  %v1538_v49 = vsel %vm1508_vm4, %v1491_v47, 0.0 }
 0x1a2   :  { %v1483_v42 = vpop.permute.xlu1 %1482  ;;  %v1217_v43 = vadd.f32 %v1216_v55, %v1215_v38 }
 0x1a3   :  { %v1530_v14 = vsel %vm1508_vm4, %v1483_v42, 0.0 }
 0x1a4   :  { %v1531_v40 = vadd.f32 %v1530_v14, %v1529_v1  ;;  %1218 = vadd.xlane.f32.xlu1 %v1217_v43 }
 0x1a6   :  { %v1533_v46 = vadd.f32 %v1532_v44, %v1531_v40 }
 0x1a8   :  { %1788 = vadd.xlane.f32.xlu1 %v2366_v39  ;;  %v1535_v0 = vadd.f32 %v1534_v21, %v1533_v46 }
 0x1aa   :  { %v1537_v48 = vadd.f32 %v1536_v12, %v1535_v0 }
 0x1ac   :  { %v1539_v50 = vadd.f32 %v1538_v49, %v1537_v48 }
 0x1ae   :  { %1540 = vadd.xlane.f32.xlu0 %v1539_v50 }
 0x1d1   :  { %v1260_v19 = vpop.xlane.xlu0 %1259 }
 0x1d2   :  { %v1261_v32 = vrot.slane %v1260_v19, 4 }
 0x1d4   :  { %v1262_v51 = vadd.f32 %v1261_v32, %v1260_v19 }
 0x1d6   :  { %v1263_v53 = vrot.slane %v1262_v51, 2 }
 0x1d8   :  { %v1264_v36 = vadd.f32 %v1263_v53, %v1262_v51 }
 0x1da   :  { %v1265_v39 = vrot.slane %v1264_v36, 1 }
 0x1dc   :  { %v1266_v62 = vadd.f32 %v1265_v39, %v1264_v36 }
 0x231   :  { %v1219_v15 = vpop.xlane.xlu1 %1218 }
 0x232   :  { %v1220_v20 = vrot.slane %v1219_v15, 4 }
 0x234   :  { %v1221_v58 = vadd.f32 %v1220_v20, %v1219_v15 }
 0x235   :  { %v1789_v57 = vpop.xlane.xlu1 %1788 }
 0x236   :  { %v1222_v26 = vrot.slane %v1221_v58, 2  ;;  %v1790_v59 = vrot.slane %v1789_v57, 4 }
 0x238   :  { %v1791_v45 = vadd.f32 %v1790_v59, %v1789_v57  ;;  %v1223_v25 = vadd.f32 %v1222_v26, %v1221_v58 }
 0x23a   :  { %v1224_v60 = vrot.slane %v1223_v25, 1  ;;  %v1792_v61 = vrot.slane %v1791_v45, 2 }
 0x23b   :  { %v1541_v28 = vpop.xlane.xlu0 %1540 }
 0x23c   :  { %v1542_v4 = vrot.slane %v1541_v28, 4  ;;  %v1225_v63 = vadd.f32 %v1224_v60, %v1223_v25  ;;  %v1793_v2 = vadd.f32 %v1792_v61, %v1791_v45 }
 0x23e   :  { %v1543_v3 = vadd.f32 %v1542_v4, %v1541_v28  ;;  %1820 = vpush %v1225_v63  ;;  %v1794_v16 = vrot.slane %v1793_v2, 1 }
 0x23f   :  { %1822 = vpush %v1266_v62 }
 0x240   :  { %v1544_v30 = vrot.slane %v1543_v3, 2  ;;  %v1795_v7 = vadd.f32 %v1794_v16, %v1793_v2 }
 0x242   :  { %v1545_v52 = vadd.f32 %v1544_v30, %v1543_v3 }
 0x244   :  { %v1546_v17 = vrot.slane %v1545_v52, 1 }
 0x246   :  { %v1547_v22 = vadd.f32 %v1546_v17, %v1545_v52 }
 0x248   :  { %1824 = vpush %v1547_v22 }
 0x249   :  { %1826 = vpush %v1795_v7 }
 0x26f   :  { %s1821_s1 = spop %1820 }
 0x270   :  { %s1227_s18 = smul.f32 0.5, %s1821_s1  ;;  %s1823_s19 = spop %1822 }
 0x272   :  { %s1797_s20 = sadd.f32 %s1823_s19, %s1227_s18 }
 0x279   :  { %s1825_s4 = spop %1824 }
 0x27a   :  { %s1798_s21 = sadd.f32 %s1825_s4, %s1797_s20  ;;  %s1827_s25 = spop %1826 }
 0x27c   :  { %s1799_s26 = sadd.f32 %s1827_s25, %s1798_s21 }
 0x27e   :  { %v1800_v31 = vstv %s1799_s26 }
 0x27f   :  { %1801 = vst [vmem:[#allocation8] sm:$0xff] %v1800_v31 }
 0x280   :  { %1913 = shalt.err (!%p1910_p0)
}
 0x281   :  { %s1914_s30 = scalar_lea.hbm %s2481_s6, 128 }
 0x282   :  { %p1915_p1 = scmp.ne.s32.totalorder %s2481_s6, %s1914_s30  ;;  %p1918_p2 = scmp.lt.u32.totalorder %s1914_s30, %s2481_s6 }
 0x284   :  { %p1920_p3 = pnand %p1918_p2, %p1915_p1 }
 0x286   :  { %1923 = shalt.err (!%p1920_p3)
}
 0x287   :  { %1811 = dma.vmem_to_hbm [thread:$0]  %s1809_s23, 128, %s2481_s6, [#allocation4]  }
 0x288   :  { %1928 = dma.done.wait [#allocation4], 128  }
 0x289   :  { %1929 = vsyncadd [#allocation4], 4294967168 }
 0x28a   :  { %1815 = vsyncpa [#allocation3], 1 }
 0x28b   :  { %1816 = vsyncpa [#allocation6], 1 }
 0x28c   :  { %1817 = vsyncpa [#allocation4], 1 }

</bundles_post_ra>
